<compile_context>
chip_gen: v7x
topology: tpu7x:2x2x1
jax: 0.10.0
libtpu: 0.0.40
codegen_flags: <defaults>
</compile_context>

<pallas_src>
import jax
import jax.numpy as jnp
from jax import lax
from jax.experimental import pallas as pl
from jax.experimental.pallas import tpu as pltpu


def _round_up(x, m):
    return ((x + m - 1) // m) * m


# ----------------------------------------------------------------------------
# Pallas kernel: centering + SharedMLP (N x [1x1 conv + folded BN + ReLU]) +
# max-pool over the nsample axis.  grid = (P // TP, B).
# ----------------------------------------------------------------------------
def _make_sa_kernel(num_layers, s):
    def kernel(*refs):
        g_ref = refs[0]              # (TP*S, C0p)   bf16  gathered, un-centered
        nx_ref = refs[1]             # (TP, C0p)     bf16  query xyz (padded w/ 0)
        out_ref = refs[-1]           # (TP, C_last_p) f32
        wb = refs[2:-1]              # interleaved (w, b) pairs

        tp, c0p = nx_ref.shape
        # Center (and, if enabled, normalize — folded into nx/slab scaling) the
        # xyz channels; feature + pad channels of nx are zero so they pass
        # through.  S is a multiple of 8 -> reshape is a sublane relabeling.
        g = g_ref[...].reshape(tp, s, c0p)
        h = (g - nx_ref[...][:, None, :]).reshape(tp * s, c0p)   # bf16

        for li in range(num_layers):
            w = wb[2 * li][...]      # (Cin_p, Cout_p) bf16
            b = wb[2 * li + 1][...]  # (1, Cout_p)     f32
            h = jnp.dot(h, w, preferred_element_type=jnp.float32)
            h = jnp.maximum(h + b, 0.0)          # f32 bias+ReLU (BN folded)
            if li + 1 < num_layers:
                h = h.astype(jnp.bfloat16)        # bf16 inter-layer activations

        c_out = out_ref.shape[-1]
        out_ref[...] = jnp.max(h.reshape(tp, s, c_out), axis=1)  # f32 max-pool
    return kernel


def _vmem_config():
    """(vmem_limit_bytes, tile_budget_bytes) chosen from the chip's VMEM size."""
    cap = None
    try:
        info = pltpu.get_tpu_info()
        cap = int(getattr(info, "vmem_capacity_bytes", 0)) or None
    except Exception:
        cap = None
    if cap is not None and cap >= 100 * 1024 * 1024:      # v5e / v6e: 128 MiB
        return 96 * 1024 * 1024, 64 * 1024 * 1024
    # v7x (64 MiB physical) or unknown chip: stay conservative.
    return 32 * 1024 * 1024, 18 * 1024 * 1024


def _choose_tp(p, s, c0p, layer_dims, budget_bytes):
    """Largest npoint tile whose lane-padded, double-buffered blocks plus f32/bf16
    intermediates fit the VMEM budget."""
    def lane(c):
        return _round_up(c, 128)

    c_last = layer_dims[-1]
    # Weights / biases (double-buffered pipeline blocks, constant index map).
    fixed = 0
    cin = c0p
    for cout in layer_dims:
        fixed += 2 * _round_up(cin, 8) * lane(cout) * 2      # bf16 weight
        fixed += 2 * 8 * lane(cout) * 4                      # f32 bias row
        cin = cout

    cands = [t for t in (4096, 2048, 1024, 512, 256, 128, 64, 32, 16, 8)
             if p % t == 0]
    if not cands:
        cands = [p]
    for tp in cands:
        rows = tp * s
        use = fixed
        use += 2 * rows * lane(c0p) * 2                      # grouped input (bf16, x2)
        use += 2 * _round_up(tp, 8) * lane(c0p) * 2          # new_xyz block (bf16, x2)
        use += 2 * _round_up(tp, 8) * lane(c_last) * 4       # output block (f32, x2)
        use += rows * lane(c0p) * 2                          # centered copy (bf16)
        for cout in layer_dims:
            use += rows * lane(cout) * 4                     # f32 matmul result
            use += rows * lane(cout) * 2                     # bf16 activation copy
        if use <= budget_bytes:
            return tp
    return cands[-1]                                         # most conservative


def sa_mlp_maxpool(grouped_flat, new_xyz_pad, weights, biases, npoint, s_pad):
    """grouped_flat: (B, P*S, C0p) bf16, new_xyz_pad: (B, P, C0p) bf16
       -> (B, P, C_last_p) f32."""
    B, _, c0p = grouped_flat.shape
    num_layers = len(weights)
    c_last_p = weights[-1].shape[1]
    layer_dims = [w.shape[1] for w in weights]

    vmem_limit, budget = _vmem_config()
    tp = _choose_tp(npoint, s_pad, c0p, layer_dims, budget)
    kernel = _make_sa_kernel(num_layers, s_pad)

    in_specs = [
        pl.BlockSpec((None, tp * s_pad, c0p), lambda pi, b: (b, pi, 0)),
        pl.BlockSpec((None, tp, c0p), lambda pi, b: (b, pi, 0)),
    ]
    args = [grouped_flat, new_xyz_pad]
    for w, bias in zip(weights, biases):
        in_specs.append(pl.BlockSpec(w.shape, lambda pi, b: (0, 0)))
        in_specs.append(pl.BlockSpec(bias.shape, lambda pi, b: (0, 0)))
        args.extend([w, bias])

    return pl.pallas_call(
        kernel,
        out_shape=jax.ShapeDtypeStruct((B, npoint, c_last_p), jnp.float32),
        grid=(npoint // tp, B),                 # large axis first (v7x megacore)
        in_specs=in_specs,
        out_specs=pl.BlockSpec((None, tp, c_last_p), lambda pi, b: (b, pi, 0)),
        compiler_params=pltpu.CompilerParams(
            dimension_semantics=("parallel", "parallel"),
            vmem_limit_bytes=vmem_limit),
    )(*args)


# ----------------------------------------------------------------------------
# Plain-JAX glue: furthest point sampling, ball query, slab build.
# ----------------------------------------------------------------------------
def furthest_point_sample(xyz, npoint):
    """xyz: (B, N, 3) -> inds: (B, npoint) int32 (greedy FPS, starts at 0)."""
    B, N, _ = xyz.shape

    def sample_one(pts):
        inds0 = jnp.zeros((npoint,), jnp.int32)
        dists0 = jnp.full((N,), 1e10, jnp.float32)

        def body(i, carry):
            inds, dists, last = carry
            d = jnp.sum((pts - pts[last]) ** 2, axis=-1)
            dists = jnp.minimum(dists, d)
            nxt = jnp.argmax(dists).astype(jnp.int32)
            inds = inds.at[i].set(nxt)
            return inds, dists, nxt

        inds, _, _ = lax.fori_loop(1, npoint, body,
                                   (inds0, dists0, jnp.int32(0)))
        return inds

    return jax.vmap(sample_one)(xyz)


def ball_query(radius, nsample, xyz, new_xyz, chunk=512):
    """xyz: (B,N,3), new_xyz: (B,P,3) -> idx: (B,P,nsample) int32.
    First `nsample` in-radius points in index order, padded with the first
    in-radius index (0 when the ball is empty, matching the CUDA kernel).
    Chunked over P so the distance matrix never exceeds (B, chunk, N)."""
    B, N, _ = xyz.shape
    P = new_xyz.shape[1]
    arange_n = jnp.arange(N, dtype=jnp.int32)

    def one(nq):                               # nq: (B, pc, 3)
        d2 = jnp.sum((nq[:, :, None, :] - xyz[:, None, :, :]) ** 2, axis=-1)
        key = jnp.where(d2 < radius * radius, arange_n, jnp.int32(N))
        neg, _ = lax.top_k(-key, nsample)      # smallest keys first
        idx = -neg
        first = idx[..., :1]
        idx = jnp.where(idx < N, idx, first)   # pad with first in-radius index
        idx = jnp.where(first < N, idx, 0)     # empty ball -> 0
        return idx.astype(jnp.int32)

    if P <= chunk:
        return one(new_xyz)

    p_pad = _round_up(P, chunk)
    nq = new_xyz
    if p_pad != P:
        nq = jnp.pad(nq, ((0, 0), (0, p_pad - P), (0, 0)))
    nq = nq.reshape(B, p_pad // chunk, chunk, 3).transpose(1, 0, 2, 3)
    idx = lax.map(one, nq)                     # (nchunk, B, chunk, ns)
    idx = idx.transpose(1, 0, 2, 3).reshape(B, p_pad, nsample)
    return idx[:, :P]


# ----------------------------------------------------------------------------
# Module
# ----------------------------------------------------------------------------
class PointnetSAModuleVotes:
    def __init__(self, *, mlp, npoint, radius, nsample, bn=True, use_xyz=True,
                 pooling='max', sigma=None, normalize_xyz=False):
        assert pooling == 'max'            # hot-path kernel implements max pool
        assert len(mlp) >= 2
        self.npoint = npoint
        self.radius = radius
        self.nsample = nsample
        self.use_xyz = use_xyz
        self.normalize_xyz = normalize_xyz
        self.sigma = sigma if sigma is not None else radius / 2.0

        mlp_spec = list(mlp)
        if use_xyz and len(mlp_spec) > 0:
            mlp_spec[0] += 3
        self.mlp_spec = mlp_spec
        self.c_last = mlp_spec[-1]

        # Padded channel dims: input/intermediates to multiple of 8, last layer
        # to multiple of 128 (lane-dense output).
        pdims = [_round_up(mlp_spec[0], 8)]
        for i, d in enumerate(mlp_spec[1:]):
            is_last = (i == len(mlp_spec) - 2)
            pdims.append(_round_up(d, 128 if is_last else 8))
        self.pdims = pdims

        # Deterministic params (1x1 conv weights + BN folded in eval mode).
        key = jax.random.PRNGKey(42)
        eps = 1e-5
        self.weights, self.biases = [], []
        for li in range(len(mlp_spec) - 1):
            cin, cout = mlp_spec[li], mlp_spec[li + 1]
            pcin, pcout = pdims[li], pdims[li + 1]
            key, kw, kg, kb, km = jax.random.split(key, 5)
            w = 0.1 * jax.random.normal(kw, (cin, cout), jnp.float32)
            gamma = 1.0 + 0.05 * jax.random.normal(kg, (cout,), jnp.float32)
            beta = 0.05 * jax.random.normal(kb, (cout,), jnp.float32)
            mean = 0.05 * jax.random.normal(km, (cout,), jnp.float32)
            var = jnp.ones((cout,), jnp.float32)
            scale = gamma / jnp.sqrt(var + eps)
            w_fold = w * scale[None, :]
            b_fold = beta - mean * scale
            wp = jnp.zeros((pcin, pcout), jnp.float32).at[:cin, :cout].set(w_fold)
            bp = jnp.zeros((1, pcout), jnp.float32).at[0, :cout].set(b_fold)
            self.weights.append(wp.astype(jnp.bfloat16))   # bf16 MXU inputs
            self.biases.append(bp)                          # f32 bias/ReLU

    # Per-point slab [xyz (optionally /radius) | features^T], channel-padded, bf16.
    def _build_point_slab(self, xyz, features):
        c0p = self.pdims[0]
        parts = []
        if self.use_xyz:
            xs = xyz / self.radius if self.normalize_xyz else xyz
            parts.append(xs)
        if features is not None:
            parts.append(jnp.transpose(features, (0, 2, 1)))
        pts = jnp.concatenate(parts, axis=-1)
        c0 = pts.shape[-1]
        if c0p > c0:
            pts = jnp.pad(pts, ((0, 0), (0, 0), (0, c0p - c0)))
        return pts.astype(jnp.bfloat16)

    # Query centers padded to C0p (zeros beyond xyz) so the kernel can subtract.
    def _new_xyz_pad(self, new_xyz):
        B, P, _ = new_xyz.shape
        c0p = self.pdims[0]
        if self.use_xyz:
            nx = new_xyz / self.radius if self.normalize_xyz else new_xyz
            nxp = jnp.concatenate(
                [nx, jnp.zeros((B, P, c0p - 3), jnp.float32)], axis=-1)
        else:
            nxp = jnp.zeros((B, P, c0p), jnp.float32)
        return nxp.astype(jnp.bfloat16)

    def __call__(self, xyz, features, inds=None):
        """xyz: (B, N, 3) f32, features: (B, C, N) f32.
        Returns new_xyz (B, npoint, 3), new_features (B, C_last, npoint),
        inds (B, npoint) int32."""
        B = xyz.shape[0]
        if inds is None:
            inds = furthest_point_sample(xyz, self.npoint)
        new_xyz = jnp.take_along_axis(xyz, inds[:, :, None], axis=1)  # (B,P,3)

        idx = ball_query(self.radius, self.nsample, xyz, new_xyz)
        # Pad nsample to a multiple of 8 with duplicates of the first in-radius
        # sample (max-pool invariant; keeps in-kernel reshapes layout-free).
        s_pad = _round_up(self.nsample, 8)
        if s_pad != self.nsample:
            pad = jnp.broadcast_to(idx[..., :1],
                                   (B, self.npoint, s_pad - self.nsample))
            idx = jnp.concatenate([idx, pad], axis=-1)

        # Single bf16 gather of the pre-concatenated slab (no concat/center/pad
        # passes in XLA); centering happens inside the Pallas kernel.
        slab = self._build_point_slab(xyz, features)               # (B, N, C0p)
        grouped = jnp.take_along_axis(
            slab, idx.reshape(B, -1)[:, :, None], axis=1)          # (B, P*S, C0p)
        nxp = self._new_xyz_pad(new_xyz)                           # (B, P, C0p)

        pooled = sa_mlp_maxpool(grouped, nxp, self.weights, self.biases,
                                self.npoint, s_pad)                # (B, P, C_last_p)
        pooled = pooled[:, :, :self.c_last]                        # drop channel pad
        new_features = jnp.transpose(pooled, (0, 2, 1))            # (B, C_last, P)
        return new_xyz, new_features, inds


if __name__ == "__main__":
    B, N, C = 2, 16, 4
    npoint, nsample, radius = 8, 8, 0.4

    key = jax.random.PRNGKey(0)
    kx, kf = jax.random.split(key)
    xyz = jax.random.uniform(kx, (B, N, 3), jnp.float32)
    features = jax.random.normal(kf, (B, C, N), jnp.float32)

    module = PointnetSAModuleVotes(
        mlp=[C, 16, 16, 32], npoint=npoint, radius=radius, nsample=nsample,
        bn=True, use_xyz=True, pooling='max', normalize_xyz=False)

    fwd = jax.jit(lambda p, f: module(p, f))
    new_xyz, new_features, inds = fwd(xyz, features)
    jax.block_until_ready((new_xyz, new_features, inds))

    assert new_xyz.shape == (B, npoint, 3)
    assert new_features.shape == (B, 32, npoint)
    assert inds.shape == (B, npoint)
    assert bool(jnp.all(jnp.isfinite(new_features)))
    print("KERNEL_OK")
</pallas_src>

<mosaic_0001>
module attributes {stable_mosaic.version = 11 : i64} {
  func.func @kernel(%arg0: i32, %arg1: i32, %arg2: memref<1x64x8xbf16, #tpu.memory_space<vmem>>, %arg3: memref<1x8x8xbf16, #tpu.memory_space<vmem>>, %arg4: memref<8x16xbf16, #tpu.memory_space<vmem>>, %arg5: memref<1x16xf32, #tpu.memory_space<vmem>>, %arg6: memref<16x16xbf16, #tpu.memory_space<vmem>>, %arg7: memref<1x16xf32, #tpu.memory_space<vmem>>, %arg8: memref<16x128xbf16, #tpu.memory_space<vmem>>, %arg9: memref<1x128xf32, #tpu.memory_space<vmem>>, %arg10: memref<1x8x128xf32, #tpu.memory_space<vmem>>) attributes {dimension_semantics = [#tpu.dimension_semantics<parallel>, #tpu.dimension_semantics<parallel>], iteration_bounds = array<i64: 1, 2>, scalar_prefetch = 0 : i64, scratch_operands = 0 : i64, tpu.core_type = #tpu.core_type<tc>, window_params = [{transform_indices = @transform_0, window_bounds = array<i64: 1, 64, 8>}, {transform_indices = @transform_1, window_bounds = array<i64: 1, 8, 8>}, {pipeline_mode = #tpu.pipeline_mode<synchronous>, transform_indices = @transform_2, window_bounds = array<i64: 8, 16>}, {pipeline_mode = #tpu.pipeline_mode<synchronous>, transform_indices = @transform_3, window_bounds = array<i64: 1, 16>}, {pipeline_mode = #tpu.pipeline_mode<synchronous>, transform_indices = @transform_4, window_bounds = array<i64: 16, 16>}, {pipeline_mode = #tpu.pipeline_mode<synchronous>, transform_indices = @transform_5, window_bounds = array<i64: 1, 16>}, {pipeline_mode = #tpu.pipeline_mode<synchronous>, transform_indices = @transform_6, window_bounds = array<i64: 16, 128>}, {pipeline_mode = #tpu.pipeline_mode<synchronous>, transform_indices = @transform_7, window_bounds = array<i64: 1, 128>}, {transform_indices = @transform_8, window_bounds = array<i64: 1, 8, 128>}]} {
    %c0 = arith.constant 0 : index
    %c0_0 = arith.constant 0 : index
    %c0_1 = arith.constant 0 : index
    %0 = vector.load %arg2[%c0, %c0_0, %c0_1] : memref<1x64x8xbf16, #tpu.memory_space<vmem>>, vector<1x64x8xbf16>
    %1 = vector.shape_cast %0 : vector<1x64x8xbf16> to vector<64x8xbf16>
    %2 = vector.shape_cast %1 : vector<64x8xbf16> to vector<8x8x8xbf16>
    %c0_2 = arith.constant 0 : index
    %c0_3 = arith.constant 0 : index
    %c0_4 = arith.constant 0 : index
    %3 = vector.load %arg3[%c0_2, %c0_3, %c0_4] : memref<1x8x8xbf16, #tpu.memory_space<vmem>>, vector<1x8x8xbf16>
    %4 = vector.shape_cast %3 : vector<1x8x8xbf16> to vector<8x8xbf16>
    %5 = vector.shape_cast %4 : vector<8x8xbf16> to vector<8x1x8xbf16>
    %6 = vector.broadcast %5 : vector<8x1x8xbf16> to vector<8x8x8xbf16>
    %7 = arith.subf %2, %6 : vector<8x8x8xbf16>
    %8 = vector.shape_cast %7 : vector<8x8x8xbf16> to vector<64x8xbf16>
    %c0_5 = arith.constant 0 : index
    %c0_6 = arith.constant 0 : index
    %9 = vector.load %arg4[%c0_5, %c0_6] : memref<8x16xbf16, #tpu.memory_space<vmem>>, vector<8x16xbf16>
    %c0_7 = arith.constant 0 : index
    %c0_8 = arith.constant 0 : index
    %10 = vector.load %arg5[%c0_7, %c0_8] : memref<1x16xf32, #tpu.memory_space<vmem>>, vector<1x16xf32>
    %cst = arith.constant dense<0.000000e+00> : vector<64x16xf32>
    %11 = tpu.matmul %8, %9, %cst {dimension_numbers = #tpu.dot_dimension_numbers<[1], [0], [0], [1], [0, 0, 1, 1], [], []>} : vector<64x8xbf16>, vector<8x16xbf16>, vector<64x16xf32> -> vector<64x16xf32>
    %12 = vector.broadcast %10 : vector<1x16xf32> to vector<64x16xf32>
    %13 = arith.addf %11, %12 : vector<64x16xf32>
    %cst_9 = arith.constant 0.000000e+00 : f32
    %14 = vector.broadcast %cst_9 : f32 to vector<64x16xf32>
    %15 = arith.maximumf %13, %14 : vector<64x16xf32>
    %16 = arith.truncf %15 : vector<64x16xf32> to vector<64x16xbf16>
    %c0_10 = arith.constant 0 : index
    %c0_11 = arith.constant 0 : index
    %17 = vector.load %arg6[%c0_10, %c0_11] : memref<16x16xbf16, #tpu.memory_space<vmem>>, vector<16x16xbf16>
    %c0_12 = arith.constant 0 : index
    %c0_13 = arith.constant 0 : index
    %18 = vector.load %arg7[%c0_12, %c0_13] : memref<1x16xf32, #tpu.memory_space<vmem>>, vector<1x16xf32>
    %cst_14 = arith.constant dense<0.000000e+00> : vector<64x16xf32>
    %19 = tpu.matmul %16, %17, %cst_14 {dimension_numbers = #tpu.dot_dimension_numbers<[1], [0], [0], [1], [0, 0, 1, 1], [], []>} : vector<64x16xbf16>, vector<16x16xbf16>, vector<64x16xf32> -> vector<64x16xf32>
    %20 = vector.broadcast %18 : vector<1x16xf32> to vector<64x16xf32>
    %21 = arith.addf %19, %20 : vector<64x16xf32>
    %cst_15 = arith.constant 0.000000e+00 : f32
    %22 = vector.broadcast %cst_15 : f32 to vector<64x16xf32>
    %23 = arith.maximumf %21, %22 : vector<64x16xf32>
    %24 = arith.truncf %23 : vector<64x16xf32> to vector<64x16xbf16>
    %c0_16 = arith.constant 0 : index
    %c0_17 = arith.constant 0 : index
    %25 = vector.load %arg8[%c0_16, %c0_17] : memref<16x128xbf16, #tpu.memory_space<vmem>>, vector<16x128xbf16>
    %c0_18 = arith.constant 0 : index
    %c0_19 = arith.constant 0 : index
    %26 = vector.load %arg9[%c0_18, %c0_19] : memref<1x128xf32, #tpu.memory_space<vmem>>, vector<1x128xf32>
    %cst_20 = arith.constant dense<0.000000e+00> : vector<64x128xf32>
    %27 = tpu.matmul %24, %25, %cst_20 {dimension_numbers = #tpu.dot_dimension_numbers<[1], [0], [0], [1], [0, 0, 1, 1], [], []>} : vector<64x16xbf16>, vector<16x128xbf16>, vector<64x128xf32> -> vector<64x128xf32>
    %28 = vector.broadcast %26 : vector<1x128xf32> to vector<64x128xf32>
    %29 = arith.addf %27, %28 : vector<64x128xf32>
    %cst_21 = arith.constant 0.000000e+00 : f32
    %30 = vector.broadcast %cst_21 : f32 to vector<64x128xf32>
    %31 = arith.maximumf %29, %30 : vector<64x128xf32>
    %32 = vector.shape_cast %31 : vector<64x128xf32> to vector<8x8x128xf32>
    %cst_22 = arith.constant dense<0xFF800000> : vector<8x128xf32>
    %33 = vector.multi_reduction <maximumf>, %32, %cst_22 [1] : vector<8x8x128xf32> to vector<8x128xf32>
    %c0_23 = arith.constant 0 : index
    %c0_24 = arith.constant 0 : index
    %c0_25 = arith.constant 0 : index
    %34 = vector.load %arg10[%c0_23, %c0_24, %c0_25] : memref<1x8x128xf32, #tpu.memory_space<vmem>>, vector<1x8x128xf32>
    %35 = vector.shape_cast %34 : vector<1x8x128xf32> to vector<8x128xf32>
    %36 = vector.shape_cast %33 : vector<8x128xf32> to vector<1x8x128xf32>
    tpu.vector_store %arg10[%c0_23, %c0_24, %c0_25], %36 {strides = array<i32>} : memref<1x8x128xf32, #tpu.memory_space<vmem>>, vector<1x8x128xf32>,
    return
  }
  func.func @transform_0(%arg0: i32, %arg1: i32) -> (i32, i32, i32) {
    %c0_i32 = arith.constant 0 : i32
    %c0_i32_0 = arith.constant 0 : i32
    return %arg1, %arg0, %c0_i32 : i32, i32, i32
  }
  func.func @transform_1(%arg0: i32, %arg1: i32) -> (i32, i32, i32) {
    %c0_i32 = arith.constant 0 : i32
    %c0_i32_0 = arith.constant 0 : i32
    return %arg1, %arg0, %c0_i32 : i32, i32, i32
  }
  func.func @transform_2(%arg0: i32, %arg1: i32) -> (i32, i32) {
    %c0_i32 = arith.constant 0 : i32
    %c0_i32_0 = arith.constant 0 : i32
    %c0_i32_1 = arith.constant 0 : i32
    return %c0_i32, %c0_i32_0 : i32, i32
  }
  func.func @transform_3(%arg0: i32, %arg1: i32) -> (i32, i32) {
    %c0_i32 = arith.constant 0 : i32
    %c0_i32_0 = arith.constant 0 : i32
    %c0_i32_1 = arith.constant 0 : i32
    return %c0_i32, %c0_i32_0 : i32, i32
  }
  func.func @transform_4(%arg0: i32, %arg1: i32) -> (i32, i32) {
    %c0_i32 = arith.constant 0 : i32
    %c0_i32_0 = arith.constant 0 : i32
    %c0_i32_1 = arith.constant 0 : i32
    return %c0_i32, %c0_i32_0 : i32, i32
  }
  func.func @transform_5(%arg0: i32, %arg1: i32) -> (i32, i32) {
    %c0_i32 = arith.constant 0 : i32
    %c0_i32_0 = arith.constant 0 : i32
    %c0_i32_1 = arith.constant 0 : i32
    return %c0_i32, %c0_i32_0 : i32, i32
  }
  func.func @transform_6(%arg0: i32, %arg1: i32) -> (i32, i32) {
    %c0_i32 = arith.constant 0 : i32
    %c0_i32_0 = arith.constant 0 : i32
    %c0_i32_1 = arith.constant 0 : i32
    return %c0_i32, %c0_i32_0 : i32, i32
  }
  func.func @transform_7(%arg0: i32, %arg1: i32) -> (i32, i32) {
    %c0_i32 = arith.constant 0 : i32
    %c0_i32_0 = arith.constant 0 : i32
    %c0_i32_1 = arith.constant 0 : i32
    return %c0_i32, %c0_i32_0 : i32, i32
  }
  func.func @transform_8(%arg0: i32, %arg1: i32) -> (i32, i32, i32) {
    %c0_i32 = arith.constant 0 : i32
    %c0_i32_0 = arith.constant 0 : i32
    return %arg1, %arg0, %c0_i32 : i32, i32, i32
  }
}

</mosaic_0001>

<bundles_post_ra>
// kernel: custom-call.6
= control target key start
LH: loop header
LB: loop body
LE: loop exit
PB: predicated region body
PF: predicated region fallthrough
CT: control target
= control target key end

     0   :  { %s6_s0 = inlined_call_operand.vmem [shape: f32[2,16], index: 0, kind: output, shape index: {}]  }

// kernel: _lambda_.1
= control target key start
LH: loop header
LB: loop body
LE: loop exit
PB: predicated region body
PF: predicated region fallthrough
CT: control target
= control target key end

     0   :  { %s1190_s27 = smov 0   ;;  %s1192_s28 = smov 0   ;;  %s1271_s0 = inlined_call_operand.vmem [shape: bf16[2,64,8], index: 0, kind: input, shape index: {}]   ;;  %s1272_s1 = inlined_call_operand.vmem [shape: bf16[2,8,8], index: 1, kind: input, shape index: {}]   ;;  %s1273_s2 = inlined_call_operand.vmem [shape: bf16[8,16], index: 2, kind: input, shape index: {}]   ;;  %s1274_s3 = inlined_call_operand.vmem [shape: f32[1,16], index: 3, kind: input, shape index: {}]   ;;  %s1275_s4 = inlined_call_operand.vmem [shape: bf16[16,16], index: 4, kind: input, shape index: {}]   ;;  %s1276_s5 = inlined_call_operand.vmem [shape: f32[1,16], index: 5, kind: input, shape index: {}]   ;;  %s1277_s6 = inlined_call_operand.vmem [shape: bf16[16,128], index: 6, kind: input, shape index: {}]   ;;  %s1278_s7 = inlined_call_operand.vmem [shape: f32[1,128], index: 7, kind: input, shape index: {}]   ;;  %s1279_s8 = inlined_call_operand.vmem [shape: f32[2,8,128], index: 8, kind: output, shape index: {}]  }
   0x1   :  { %s1194_s29 = smov 0  }
   0x2 LB: > { %s27_s30 = sadd.s32 1, %s1138_s28  ;;  %p1010_p0 = scmp.ge.s32.totalorder %s1142_s29, 1  ;;  %s1142_s29 = sphi %s1194_s29, %s18_s29   ;;  %s1138_s28 = sphi %s1192_s28, %s1281_s28   ;;  %s1134_s27 = sphi %s1190_s27, %s1280_s27  }
   0x3   : > { %p28_p1 = scmp.ge.s32.totalorder %s27_s30, 2  ;;  %p297_p2 = scmp.lt.s32.totalorder %s1142_s29, 3 }
   0x5   : > { %s1283_s30 = smov (%p28_p1, %s27_s30), 0  ;;  %p298_p3 = pnand %p1010_p0, %p297_p2 }
   0x6   : > { %v515_v0 = vld [vmem:[%s1273_s2] sm:$0xf] (!%p298_p3)  ;;  %vm556_vm0 = vcmask (!%p298_p3), 1043456   ;;  %p345_p4 = scmp.lt.s32.totalorder (!%p298_p3), %s1134_s27, 1  ;;  %v390_v1 = vlaneseq (!%p298_p3)  ;;  %v1144_v3 = vmov (!%p298_p3), 1966171168  }
   0x7   : > { %301 = sbr.rel (%p298_p3) target bundleno = 723 (0x2d3), region = 52  ;;  %1091 = vmatprep.subr.msk.bf16.mxu0 (!%p298_p3), %vm556_vm0, %v515_v0  ;;  %v558_v2 = vsel (!%p298_p3), %vm556_vm0, %v515_v0, 0  ;;  %v388_v4 = vunpack.c.l.s4 (!%p298_p3), %v1144_v3  ;;  %1092 = vmatprep.subr.msk.bf16.mxu1 (!%p298_p3), %vm556_vm0, %v515_v0  ;;  %vm543_vm1 = vcmask (!%p298_p3), 64512   ;;  %vm652_vm2 = vcmask (!%p298_p3), 130048  }
   0x8   : > { %1060 = vmatpush3.bf16.msra.mxu0 (!%p298_p3), %v558_v2  ;;  %v391_v5 = vshrl.u32 (!%p298_p3), %v390_v1, 7  ;;  %1090 = vmatpush3.bf16.msra.mxu1 (!%p298_p3), %v558_v2  ;;  %vm898_vm3 = vcmask (!%p298_p3), 1041409   ;;  %vm900_vm4 = vcmask (!%p298_p3), 1042434   ;;  %vm902_vm5 = vcmask (!%p298_p3), 1043459  }
   0x9   : > { %v389_v6 = vunpack.c.0.s8 (!%p298_p3), %v388_v4  ;;  %vm904_vm6 = vcmask (!%p298_p3), 1044484   ;;  %vm906_vm7 = vcmask (!%p298_p3), 1045509   ;;  %vm908_vm8 = vcmask (!%p298_p3), 1046534  }
   0xa   : > { %v421_v11 = vsub.s32 (!%p298_p3), 0, %v391_v5  ;;  %vm910_vm9 = vcmask (!%p298_p3), 1047559  }
   0xb   : > { %v392_v7 = vsub.s32 (!%p298_p3), %v389_v6, %v391_v5 }
   0xe   : > { %s1285_s27 = smov (!%p345_p4, %s1134_s27), 1 }
   0xf   : > { %s1013_s11 = sshll.u32 %s1285_s27, 2  ;;  %s1043_s15 = sshll.u32 %s1285_s27, 5 }
  0x10   : > { %s360_s14 = scalar_lea.vmem %s1272_s1, %s1013_s11  ;;  %s1221_s18 = scalar_lea.vmem %s1271_s0, %s1043_s15 }
  0x11   : > { %v1015_v8 = vld.sshfl [vmem:[%s360_s14] sm:$0x33 pattern:$0x75316420]  ;;  %v370_v36 = vld [vmem:[%s1221_s18 + $0x4] sm:$0xf] }
  0x12   : > { %v386_v9 = vcombine.high %v1015_v8, %v1015_v8  ;;  %v393_v10 = vrot.slane %v1015_v8, %v392_v7  ;;  %v369_v27 = vld [vmem:[%s1221_s18] sm:$0xf]  ;;  %v371_v37 = vld [vmem:[%s1221_s18 + $0x8] sm:$0xf]  ;;  %v373_v46 = vld [vmem:[%s1221_s18 + $0x10] sm:$0xf] }
  0x13   : > { %v372_v47 = vld [vmem:[%s1221_s18 + $0xc] sm:$0xf]  ;;  %v374_v55 = vld [vmem:[%s1221_s18 + $0x14] sm:$0xf]  ;;  %v375_v56 = vld [vmem:[%s1221_s18 + $0x18] sm:$0xf] }
  0x14   : > { %v400_v12 = vrot.slane %v386_v9, %v392_v7  ;;  %v404_v13 = vunpack.i.h.s16 %v393_v10  ;;  %v1016_v14 = vpack.i.b16 %v393_v10, %v393_v10  ;;  %v401_v15 = vcombine.high %v393_v10, %v393_v10  ;;  %v376_v63 = vld [vmem:[%s1221_s18 + $0x1c] sm:$0xf]  ;;  %v1118_v7 = vld [vmem:[%s1275_s4] sm:$0xff]   ;;  %s1014_s11 = sshll.u32 %s1285_s27, 3 }
  0x15   : > { %1069 = vmatprep.subr.bf16.mxu1 %v1118_v7  ;;  %v1020_v8 = vld [vmem:[%s1274_s3] ss:$0 sm:$0xff]  ;;  %s367_s14 = scalar_lea.vmem %s1279_s8, %s1014_s11 }
  0x16   : > { %v412_v16 = vpack.i.b16 %v404_v13, %v404_v13  ;;  %v422_v17 = vrot.slane %v1016_v14, %v421_v11  ;;  %v406_v18 = vunpack.i.h.s16 %v400_v12  ;;  %v1017_v19 = vpack.i.b16 %v400_v12, %v400_v12 }
  0x17   : > { %v408_v20 = vunpack.i.h.s16 %v401_v15  ;;  %v1018_v21 = vpack.i.b16 %v401_v15, %v401_v15  ;;  %v402_v22 = vcombine.high %v400_v12, %v400_v12 }
  0x18   : > { %v426_v23 = vrot.slane %v412_v16, %v421_v11  ;;  %v452_v24 = vpack.i.b16 %v422_v17, %v422_v17  ;;  %v414_v25 = vpack.i.b16 %v406_v18, %v406_v18  ;;  %v430_v26 = vrot.slane %v1017_v19, %v421_v11 }
  0x19   : > { %v416_v28 = vpack.i.b16 %v408_v20, %v408_v20  ;;  %v438_v29 = vrot.slane %v1018_v21, %v421_v11  ;;  %v410_v30 = vunpack.i.h.s16 %v402_v22  ;;  %v1019_v31 = vpack.i.b16 %v402_v22, %v402_v22 }
  0x1a   : > { %v457_v32 = vrot.slane %v452_v24, %v421_v11  ;;  %v459_v33 = vpack.i.b16 %v426_v23, %v426_v23  ;;  %v434_v34 = vrot.slane %v414_v25, %v421_v11  ;;  %v466_v35 = vpack.i.b16 %v430_v26, %v430_v26 }
  0x1b   : > { %v442_v38 = vrot.slane %v416_v28, %v421_v11  ;;  %v480_v39 = vpack.i.b16 %v438_v29, %v438_v29  ;;  %v418_v40 = vpack.i.b16 %v410_v30, %v410_v30  ;;  %v446_v41 = vrot.slane %v1019_v31, %v421_v11 }
  0x1c   : > { %v464_v42 = vrot.slane %v459_v33, %v421_v11  ;;  %v507_v43 = vsub.bf16 %v369_v27, %v457_v32  ;;  %v471_v44 = vrot.slane %v466_v35, %v421_v11  ;;  %v473_v45 = vpack.i.b16 %v434_v34, %v434_v34 }
  0x1d   : > { %v485_v48 = vrot.slane %v480_v39, %v421_v11  ;;  %v487_v49 = vpack.i.b16 %v442_v38, %v442_v38  ;;  %v450_v50 = vrot.slane %v418_v40, %v421_v11  ;;  %v494_v51 = vpack.i.b16 %v446_v41, %v446_v41  ;;  %v1029_v38 = vld [vmem:[%s1276_s5] ss:$0 sm:$0xff] }
  0x1e   : > { %v508_v52 = vsub.bf16 %v370_v36, %v464_v42  ;;  %v478_v53 = vrot.slane %v473_v45, %v421_v11  ;;  %v509_v54 = vsub.bf16 %v371_v37, %v471_v44  ;;  %v1119_v37 = vld [vmem:[%s1277_s6] sm:$0xff]  }
  0x1f   : > { %v492_v57 = vrot.slane %v487_v49, %v421_v11  ;;  %v511_v58 = vsub.bf16 %v373_v46, %v485_v48  ;;  %v499_v59 = vrot.slane %v494_v51, %v421_v11  ;;  %v501_v60 = vpack.i.b16 %v450_v50, %v450_v50  ;;  %1079 = vmatprep.subr.bf16.mxu0 %v1119_v37 }
  0x20   : > { %v1021_v61 = vcombine.low %v507_v43, %v508_v52  ;;  %v510_v62 = vsub.bf16 %v372_v47, %v478_v53 }
  0x21   : > { %v512_v0 = vsub.bf16 %v374_v55, %v492_v57  ;;  %v506_v1 = vrot.slane %v501_v60, %v421_v11  ;;  %v513_v2 = vsub.bf16 %v375_v56, %v499_v59 }
  0x22   : > { %1061 = vmatprep.mubr.msk.bf16.mxu0 %vm543_vm1, %v1021_v61  ;;  %v1022_v3 = vcombine.low %v509_v54, %v510_v62 }
  0x23   : > { %v1023_v4 = vcombine.low %v511_v58, %v512_v0  ;;  %v514_v5 = vsub.bf16 %v376_v63, %v506_v1 }
  0x24   : > { %1062 = vmatmul.mubr.msk.bf16.vlgmr.msra.gmra.mrb[0].mxu0 %vm543_vm1, %v1022_v3  ;;  %v1035_v3 = vld [vmem:[%s1278_s7] ss:$0 sm:$0xff] }
  0x25   : > { %1065 = vmatprep.mubr.msk.bf16.mxu1 %vm543_vm1, %v1023_v4  ;;  %v1024_v6 = vcombine.low %v513_v2, %v514_v5  ;;  %1080 = vmatpush3.bf16.msra.mxu0 %v1119_v37 }
  0x27   : > { %1066 = vmatmul.mubr.msk.bf16.vlgmr.msra.gmra.mrb[0].mxu1 %vm543_vm1, %v1024_v6 }
  0x28   : > { %1070 = vmatpush3.bf16.msra.mxu1 %v1118_v7 }
  0xf7   : > { %v1063_v9 = vpop.f32.mrb[0].mxu0 }
  0xf8   : > { %v603_v10 = vadd.f32 %v1063_v9, %v1020_v8  ;;  %v594_v11 = vpop.f32.mrb[1].mxu0 }
  0xf9   : > { %v595_v12 = vadd.f32 %v1020_v8, %v594_v11  ;;  %v1064_v13 = vpop.f32.mrb[2].mxu0 }
  0xfa   : > { %v606_v14 = vadd.f32 %v1064_v13, %v1020_v8  ;;  %v597_v15 = vpop.f32.mrb[3].mxu0  ;;  %v1067_v16 = vpop.f32.mrb[0].mxu1  ;;  %v627_v20 = vmax.f32 %v603_v10, 0.0 }
  0xfb   : > { %v598_v17 = vadd.f32 %v1020_v8, %v597_v15  ;;  %v619_v18 = vadd.f32 %v1067_v16, %v1020_v8  ;;  %v610_v19 = vpop.f32.mrb[1].mxu1  ;;  %v625_v24 = vmax.f32 %v595_v12, 0.0 }
  0xfc   : > { %v628_v21 = vmax.f32 %v606_v14, 0.0  ;;  %v611_v22 = vadd.f32 %v1020_v8, %v610_v19  ;;  %v1068_v23 = vpop.f32.mrb[2].mxu1 }
  0xfd   : > { %v626_v25 = vmax.f32 %v598_v17, 0.0  ;;  %v631_v26 = vmax.f32 %v619_v18, 0.0  ;;  %v622_v27 = vadd.f32 %v1068_v23, %v1020_v8  ;;  %v613_v28 = vpop.f32.mrb[3].mxu1 }
  0xfe   : > { %v634_v29 = vpack.c.bf16 %v628_v21, %v627_v20  ;;  %v629_v30 = vmax.f32 %v611_v22, 0.0  ;;  %v614_v31 = vadd.f32 %v1020_v8, %v613_v28 }
  0xff   : > { %v633_v32 = vpack.c.bf16 %v626_v25, %v625_v24  ;;  %v632_v33 = vmax.f32 %v622_v27, 0.0 }
 0x100   : > { %v630_v34 = vmax.f32 %v614_v31, 0.0 }
 0x101   : > { %v636_v35 = vpack.c.bf16 %v632_v33, %v631_v26  ;;  %1071 = vmatprep.mubr.msk.bf16.mxu1 %vm652_vm2, %v633_v32 }
 0x102   : > { %v635_v36 = vpack.c.bf16 %v630_v34, %v629_v30  ;;  %1072 = vmatmul.mubr.msk.bf16.vlgmr.msra.gmra.mrb[4].mxu1 %vm652_vm2, %v634_v29 }
 0x104   : > { %1075 = vmatprep.mubr.msk.bf16.mxu1 %vm652_vm2, %v635_v36 }
 0x10a   : > { %1076 = vmatmul.mubr.msk.bf16.gmra.mrb[8].mxu1 %vm652_vm2, %v636_v35 }
 0x1d5   : > { %v1073_v39 = vpop.f32.mrb[4].mxu1 }
 0x1d6   : > { %v708_v40 = vadd.f32 %v1073_v39, %v1029_v38  ;;  %v699_v41 = vpop.f32.mrb[5].mxu1 }
 0x1d7   : > { %v700_v42 = vadd.f32 %v1029_v38, %v699_v41  ;;  %v1074_v43 = vpop.f32.mrb[6].mxu1 }
 0x1d8   : > { %v711_v44 = vadd.f32 %v1074_v43, %v1029_v38  ;;  %v702_v45 = vpop.f32.mrb[7].mxu1  ;;  %v732_v47 = vmax.f32 %v708_v40, 0.0 }
 0x1d9   : > { %v703_v46 = vadd.f32 %v1029_v38, %v702_v45  ;;  %v730_v49 = vmax.f32 %v700_v42, 0.0 }
 0x1da   : > { %v733_v48 = vmax.f32 %v711_v44, 0.0 }
 0x1db   : > { %v731_v50 = vmax.f32 %v703_v46, 0.0 }
 0x1dc   : > { %v739_v51 = vpack.c.bf16 %v733_v48, %v732_v47 }
 0x1dd   : > { %v738_v52 = vpack.c.bf16 %v731_v50, %v730_v49  ;;  %v1077_v53 = vpop.f32.mrb[8].mxu1 }
 0x1de   : > { %v724_v54 = vadd.f32 %v1077_v53, %v1029_v38  ;;  %v715_v55 = vpop.f32.mrb[9].mxu1 }
 0x1df   : > { %v716_v56 = vadd.f32 %v1029_v38, %v715_v55  ;;  %v1078_v57 = vpop.f32.mrb[10].mxu1  ;;  %1081 = vmatprep.mubr.msk.bf16.mxu0 %vm652_vm2, %v738_v52 }
 0x1e0   : > { %v727_v58 = vadd.f32 %v1078_v57, %v1029_v38  ;;  %v718_v59 = vpop.f32.mrb[11].mxu1  ;;  %1082 = vmatmul.mubr.msk.bf16.vlgmr.msra.gmra.mrb[4].mxu0 %vm652_vm2, %v739_v51  ;;  %v736_v61 = vmax.f32 %v724_v54, 0.0 }
 0x1e1   : > { %v719_v60 = vadd.f32 %v1029_v38, %v718_v59  ;;  %v734_v63 = vmax.f32 %v716_v56, 0.0 }
 0x1e2   : > { %v737_v62 = vmax.f32 %v727_v58, 0.0 }
 0x1e3   : > { %v735_v0 = vmax.f32 %v719_v60, 0.0 }
 0x1e4   : > { %v741_v1 = vpack.c.bf16 %v737_v62, %v736_v61 }
 0x1e5   : > { %v740_v2 = vpack.c.bf16 %v735_v0, %v734_v63 }
 0x1e7   : > { %1085 = vmatprep.mubr.msk.bf16.mxu0 %vm652_vm2, %v740_v2 }
 0x1e8   : > { %1086 = vmatmul.mubr.msk.bf16.gmra.mrb[8].mxu0 %vm652_vm2, %v741_v1 }
 0x2b3   : > { %v1083_v4 = vpop.f32.mrb[4].mxu0 }
 0x2b4   : > { %v812_v5 = vadd.f32 %v1083_v4, %v1035_v3  ;;  %v803_v6 = vpop.f32.mrb[5].mxu0 }
 0x2b5   : > { %v804_v7 = vadd.f32 %v1035_v3, %v803_v6  ;;  %v1084_v8 = vpop.f32.mrb[6].mxu0 }
 0x2b6   : > { %v836_v9 = vmax.f32 %v812_v5, 0.0  ;;  %v815_v10 = vadd.f32 %v1084_v8, %v1035_v3  ;;  %v806_v11 = vpop.f32.mrb[7].mxu0 }
 0x2b7   : > { %v834_v12 = vmax.f32 %v804_v7, 0.0  ;;  %v807_v13 = vadd.f32 %v1035_v3, %v806_v11 }
 0x2b8   : > { %v854_v14 = vrot.slane %v836_v9, 4  ;;  %v837_v15 = vmax.f32 %v815_v10, 0.0 }
 0x2b9   : > { %v842_v16 = vrot.slane %v834_v12, 4  ;;  %v835_v17 = vmax.f32 %v807_v13, 0.0 }
 0x2ba   : > { %v855_v18 = vmax.f32 %v836_v9, %v854_v14  ;;  %v860_v19 = vrot.slane %v837_v15, 4 }
 0x2bb   : > { %v843_v20 = vmax.f32 %v834_v12, %v842_v16  ;;  %v848_v21 = vrot.slane %v835_v17, 4  ;;  %v1087_v22 = vpop.f32.mrb[8].mxu0 }
 0x2bc   : > { %v856_v23 = vrot.slane %v855_v18, 2  ;;  %v861_v24 = vmax.f32 %v837_v15, %v860_v19  ;;  %v828_v25 = vadd.f32 %v1087_v22, %v1035_v3  ;;  %v819_v26 = vpop.f32.mrb[9].mxu0 }
 0x2bd   : > { %v844_v27 = vrot.slane %v843_v20, 2  ;;  %v849_v28 = vmax.f32 %v835_v17, %v848_v21  ;;  %v820_v29 = vadd.f32 %v1035_v3, %v819_v26  ;;  %v1088_v30 = vpop.f32.mrb[10].mxu0 }
 0x2be   : > { %v857_v31 = vmax.f32 %v855_v18, %v856_v23  ;;  %v862_v32 = vrot.slane %v861_v24, 2  ;;  %v840_v33 = vmax.f32 %v828_v25, 0.0  ;;  %v831_v34 = vadd.f32 %v1088_v30, %v1035_v3  ;;  %v822_v35 = vpop.f32.mrb[11].mxu0 }
 0x2bf   : > { %v845_v36 = vmax.f32 %v843_v20, %v844_v27  ;;  %v850_v37 = vrot.slane %v849_v28, 2  ;;  %v838_v38 = vmax.f32 %v820_v29, 0.0  ;;  %v823_v39 = vadd.f32 %v1035_v3, %v822_v35 }
 0x2c0   : > { %v863_v40 = vmax.f32 %v861_v24, %v862_v32  ;;  %v878_v41 = vrot.slane %v840_v33, 4  ;;  %v841_v42 = vmax.f32 %v831_v34, 0.0  ;;  %v858_v47 = vrot.slane %v857_v31, 1 }
 0x2c1   : > { %v846_v43 = vrot.slane %v845_v36, 1  ;;  %v851_v44 = vmax.f32 %v849_v28, %v850_v37  ;;  %v866_v45 = vrot.slane %v838_v38, 4  ;;  %v839_v46 = vmax.f32 %v823_v39, 0.0 }
 0x2c2   : > { %v879_v48 = vmax.f32 %v840_v33, %v878_v41  ;;  %v884_v49 = vrot.slane %v841_v42, 4  ;;  %v864_v50 = vrot.slane %v863_v40, 1  ;;  %v859_v60 = vmax.f32 %v857_v31, %v858_v47 }
 0x2c3   : > { %v852_v51 = vrot.slane %v851_v44, 1  ;;  %v867_v52 = vmax.f32 %v838_v38, %v866_v45  ;;  %v872_v53 = vrot.slane %v839_v46, 4  ;;  %v847_v56 = vmax.f32 %v845_v36, %v846_v43 }
 0x2c4   : > { %v880_v54 = vrot.slane %v879_v48, 2  ;;  %v885_v55 = vmax.f32 %v841_v42, %v884_v49  ;;  %v865_v63 = vmax.f32 %v863_v40, %v864_v50 }
 0x2c5   : > { %v853_v57 = vmax.f32 %v851_v44, %v852_v51  ;;  %v868_v58 = vrot.slane %v867_v52, 2  ;;  %v873_v59 = vmax.f32 %v839_v46, %v872_v53 }
 0x2c6   : > { %v881_v61 = vmax.f32 %v879_v48, %v880_v54  ;;  %v886_v62 = vrot.slane %v885_v55, 2 }
 0x2c7   : > { %v899_v0 = vsel %vm898_vm3, %v853_v57, %v847_v56  ;;  %v869_v1 = vmax.f32 %v867_v52, %v868_v58  ;;  %v874_v2 = vrot.slane %v873_v59, 2 }
 0x2c8   : > { %v901_v3 = vsel %vm900_vm4, %v859_v60, %v899_v0  ;;  %v887_v4 = vmax.f32 %v885_v55, %v886_v62  ;;  %v882_v8 = vrot.slane %v881_v61, 1 }
 0x2c9   : > { %v870_v5 = vrot.slane %v869_v1, 1  ;;  %v903_v6 = vsel %vm902_vm5, %v865_v63, %v901_v3  ;;  %v875_v7 = vmax.f32 %v873_v59, %v874_v2 }
 0x2ca   : > { %v888_v10 = vrot.slane %v887_v4, 1  ;;  %v883_v14 = vmax.f32 %v881_v61, %v882_v8 }
 0x2cb   : > { %v871_v9 = vmax.f32 %v869_v1, %v870_v5  ;;  %v876_v11 = vrot.slane %v875_v7, 1 }
 0x2cc   : > { %v889_v15 = vmax.f32 %v887_v4, %v888_v10 }
 0x2cd   : > { %v905_v12 = vsel %vm904_vm6, %v871_v9, %v903_v6  ;;  %v877_v13 = vmax.f32 %v875_v7, %v876_v11 }
 0x2cf   : > { %v907_v16 = vsel %vm906_vm7, %v877_v13, %v905_v12 }
 0x2d0   : > { %v909_v17 = vsel %vm908_vm8, %v883_v14, %v907_v16 }
 0x2d1   : > { %v911_v18 = vsel %vm910_vm9, %v889_v15, %v909_v17 }
 0x2d2   : > { %913 = vst [vmem:[%s367_s14] sm:$0xff] %v911_v18 }
 0x2d3 PF: > { %s18_s29 = sadd.s32 1, %s1142_s29   ;;  %s1280_s27 = smov %s1138_s28 }
 0x2d4   : > { %p15_p5 = scmp.ge.s32.totalorder %s18_s29, 4   ;;  %s1281_s28 = smov %s1283_s30 }
 0x2d6   :  { %17 = sbr.rel (!%p15_p5) target bundleno = 2 (0x2), region = 85 }

</bundles_post_ra>
